<compile_context>
chip_gen: v7x
topology: tpu7x:2x2x1
jax: 0.10.0
libtpu: 0.0.40
codegen_flags: <defaults>
</compile_context>

<pallas_src>
import jax
import jax.numpy as jnp
from jax.experimental import pallas as pl
from jax.experimental.pallas import tpu as pltpu


def _row_sumsq_kernel(xr1_ref, xr2_ref, x_ref, ss1_ref, ss2_ref):
    # Cast to f32 inside the kernel (inputs stream in their native dtype).
    x = x_ref[...].astype(jnp.float32)
    d1 = xr1_ref[...].astype(jnp.float32) - x
    d2 = xr2_ref[...].astype(jnp.float32) - x
    # Per-row sum of squares over the lane axis -> (TN, 1).
    ss1_ref[...] = jnp.sum(d1 * d1, axis=1, keepdims=True)
    ss2_ref[...] = jnp.sum(d2 * d2, axis=1, keepdims=True)


def _choose_row_chunk(B, D):
    """Pick TD (row width): a multiple of 128 dividing D, preferring a value
    that makes the total row count B*(D//TD) a multiple of 8 (sublane-dense)."""
    cands = [td for td in (1024, 512, 256, 128) if D % td == 0]
    for td in cands:
        if (B * (D // td)) % 8 == 0:
            return td
    if cands:
        return cands[-1]  # most rows -> least relative sublane padding
    return D  # fallback: whole flattened sample per row (full-dim block is legal)


def _choose_row_tile(N, TD):
    """Rows per grid step: ~1 MiB f32 per input block, multiple of 8."""
    max_rows = max(8, (256 * 1024) // TD)
    if N <= max_rows:
        return N  # single row-block equals full dim -> always a legal block
    return (max_rows // 8) * 8


def per_sample_mse(xr1, xr2, x):
    """Returns (mse1, mse2), each shape (B,) float32, via a tiled Pallas kernel."""
    B = x.shape[0]
    D = 1
    for s in x.shape[1:]:
        D *= int(s)

    TD = _choose_row_chunk(B, D)
    G = D // TD
    N = B * G
    TN = _choose_row_tile(N, TD)
    grid_rows = pl.cdiv(N, TN)

    # Native dtype straight through the pallas_call (cast happens per-tile).
    xr1r = xr1.reshape(N, TD)
    xr2r = xr2.reshape(N, TD)
    xr = x.reshape(N, TD)

    bytes_accessed = (
        N * TD * (xr1r.dtype.itemsize + xr2r.dtype.itemsize + xr.dtype.itemsize)
        + 2 * N * 4
    )
    cost = pl.CostEstimate(
        flops=6 * N * TD,            # 2x (sub + mul + reduce-add) per element
        transcendentals=0,
        bytes_accessed=int(bytes_accessed),
    )

    ss1, ss2 = pl.pallas_call(
        _row_sumsq_kernel,
        out_shape=(
            jax.ShapeDtypeStruct((N, 1), jnp.float32),
            jax.ShapeDtypeStruct((N, 1), jnp.float32),
        ),
        grid=(grid_rows,),
        in_specs=[
            pl.BlockSpec((TN, TD), lambda i: (i, 0)),
            pl.BlockSpec((TN, TD), lambda i: (i, 0)),
            pl.BlockSpec((TN, TD), lambda i: (i, 0)),
        ],
        out_specs=(
            pl.BlockSpec((TN, 1), lambda i: (i, 0)),
            pl.BlockSpec((TN, 1), lambda i: (i, 0)),
        ),
        compiler_params=pltpu.CompilerParams(
            dimension_semantics=("parallel",),  # shards rows across TCs on v7x
        ),
        cost_estimate=cost,
    )(xr1r, xr2r, xr)

    inv_d = jnp.float32(1.0 / D)
    mse1 = jnp.sum(ss1.reshape(B, G), axis=1) * inv_d
    mse2 = jnp.sum(ss2.reshape(B, G), axis=1) * inv_d
    return mse1, mse2


def co_teaching_loss(xr1, xr2, x, noise_rate=0.1):
    """JAX/Pallas equivalent of CoTeachingLoss.forward."""
    B = x.shape[0]
    mse1, mse2 = per_sample_mse(xr1, xr2, x)
    # TODO(synk): argsort / tiny gather+mean over length-B vectors stays in JAX
    # glue; there is no hot-path Pallas benefit for these O(B) ops.
    idxsortd1 = jnp.argsort(mse1)
    idxsortd2 = jnp.argsort(mse2)
    rem_num = int(B * (1.0 - noise_rate))
    loss1 = jnp.mean(mse1[idxsortd2[:rem_num]])
    loss2 = jnp.mean(mse2[idxsortd1[:rem_num]])
    return loss1, loss2


if __name__ == "__main__":
    key = jax.random.PRNGKey(0)
    k1, k2, k3 = jax.random.split(key, 3)
    B, C, H, W = 2, 4, 16, 16
    xr1 = jax.random.normal(k1, (B, C, H, W), dtype=jnp.float32)
    xr2 = jax.random.normal(k2, (B, C, H, W), dtype=jnp.float32)
    x = jax.random.normal(k3, (B, C, H, W), dtype=jnp.float32)

    loss1, loss2 = co_teaching_loss(xr1, xr2, x, noise_rate=0.1)
    jax.block_until_ready((loss1, loss2))

    # reference check in plain JAX
    m1_ref = jnp.mean((xr1 - x) ** 2, axis=(1, 2, 3))
    m2_ref = jnp.mean((xr2 - x) ** 2, axis=(1, 2, 3))
    rem = int(B * 0.9)
    l1_ref = jnp.mean(m1_ref[jnp.argsort(m2_ref)[:rem]])
    l2_ref = jnp.mean(m2_ref[jnp.argsort(m1_ref)[:rem]])
    assert jnp.allclose(loss1, l1_ref, atol=1e-5), (loss1, l1_ref)
    assert jnp.allclose(loss2, l2_ref, atol=1e-5), (loss2, l2_ref)

    print("KERNEL_OK")
</pallas_src>

<mosaic_0001>
module attributes {stable_mosaic.version = 11 : i64} {
  func.func @_row_sumsq_kernel(%arg0: i32, %arg1: memref<8x256xf32, #tpu.memory_space<vmem>>, %arg2: memref<8x256xf32, #tpu.memory_space<vmem>>, %arg3: memref<8x256xf32, #tpu.memory_space<vmem>>, %arg4: memref<8x1xf32, #tpu.memory_space<vmem>>, %arg5: memref<8x1xf32, #tpu.memory_space<vmem>>) attributes {dimension_semantics = [#tpu.dimension_semantics<parallel>], iteration_bounds = array<i64: 1>, scalar_prefetch = 0 : i64, scratch_operands = 0 : i64, tpu.core_type = #tpu.core_type<tc>, window_params = [{transform_indices = @transform_0, window_bounds = array<i64: 8, 256>}, {transform_indices = @transform_1, window_bounds = array<i64: 8, 256>}, {transform_indices = @transform_2, window_bounds = array<i64: 8, 256>}, {transform_indices = @transform_3, window_bounds = array<i64: 8, 1>}, {transform_indices = @transform_4, window_bounds = array<i64: 8, 1>}]} {
    %c0 = arith.constant 0 : index
    %c0_0 = arith.constant 0 : index
    %0 = vector.load %arg3[%c0, %c0_0] : memref<8x256xf32, #tpu.memory_space<vmem>>, vector<8x256xf32>
    %c0_1 = arith.constant 0 : index
    %c0_2 = arith.constant 0 : index
    %1 = vector.load %arg1[%c0_1, %c0_2] : memref<8x256xf32, #tpu.memory_space<vmem>>, vector<8x256xf32>
    %2 = arith.subf %1, %0 : vector<8x256xf32>
    %c0_3 = arith.constant 0 : index
    %c0_4 = arith.constant 0 : index
    %3 = vector.load %arg2[%c0_3, %c0_4] : memref<8x256xf32, #tpu.memory_space<vmem>>, vector<8x256xf32>
    %4 = arith.subf %3, %0 : vector<8x256xf32>
    %5 = arith.mulf %2, %2 : vector<8x256xf32>
    %cst = arith.constant dense<0.000000e+00> : vector<8xf32>
    %6 = vector.multi_reduction <add>, %5, %cst [1] : vector<8x256xf32> to vector<8xf32>
    %7 = vector.shape_cast %6 : vector<8xf32> to vector<8x1xf32>
    %c0_5 = arith.constant 0 : index
    %c0_6 = arith.constant 0 : index
    %8 = vector.load %arg4[%c0_5, %c0_6] : memref<8x1xf32, #tpu.memory_space<vmem>>, vector<8x1xf32>
    tpu.vector_store %arg4[%c0_5, %c0_6], %7 {strides = array<i32>} : memref<8x1xf32, #tpu.memory_space<vmem>>, vector<8x1xf32>,
    %9 = arith.mulf %4, %4 : vector<8x256xf32>
    %cst_7 = arith.constant dense<0.000000e+00> : vector<8xf32>
    %10 = vector.multi_reduction <add>, %9, %cst_7 [1] : vector<8x256xf32> to vector<8xf32>
    %11 = vector.shape_cast %10 : vector<8xf32> to vector<8x1xf32>
    %c0_8 = arith.constant 0 : index
    %c0_9 = arith.constant 0 : index
    %12 = vector.load %arg5[%c0_8, %c0_9] : memref<8x1xf32, #tpu.memory_space<vmem>>, vector<8x1xf32>
    tpu.vector_store %arg5[%c0_8, %c0_9], %11 {strides = array<i32>} : memref<8x1xf32, #tpu.memory_space<vmem>>, vector<8x1xf32>,
    return
  }
  func.func @transform_0(%arg0: i32) -> (i32, i32) {
    %c0_i32 = arith.constant 0 : i32
    %c0_i32_0 = arith.constant 0 : i32
    return %arg0, %c0_i32 : i32, i32
  }
  func.func @transform_1(%arg0: i32) -> (i32, i32) {
    %c0_i32 = arith.constant 0 : i32
    %c0_i32_0 = arith.constant 0 : i32
    return %arg0, %c0_i32 : i32, i32
  }
  func.func @transform_2(%arg0: i32) -> (i32, i32) {
    %c0_i32 = arith.constant 0 : i32
    %c0_i32_0 = arith.constant 0 : i32
    return %arg0, %c0_i32 : i32, i32
  }
  func.func @transform_3(%arg0: i32) -> (i32, i32) {
    %c0_i32 = arith.constant 0 : i32
    %c0_i32_0 = arith.constant 0 : i32
    return %arg0, %c0_i32 : i32, i32
  }
  func.func @transform_4(%arg0: i32) -> (i32, i32) {
    %c0_i32 = arith.constant 0 : i32
    %c0_i32_0 = arith.constant 0 : i32
    return %arg0, %c0_i32 : i32, i32
  }
}

</mosaic_0001>

<bundles_post_ra>
// kernel: tpu_custom_call.1
= control target key start
LH: loop header
LB: loop body
LE: loop exit
PB: predicated region body
PF: predicated region fallthrough
CT: control target
= control target key end

     0   :  { %10 = vsyncpa [#allocation3], 0  ;;  %s227_s0 = inlined_call_operand.hbm [shape: f32[8,256], index: 0, kind: input, shape index: {}]   ;;  %s228_s1 = inlined_call_operand.hbm [shape: f32[8,256], index: 1, kind: input, shape index: {}]   ;;  %s229_s2 = inlined_call_operand.hbm [shape: f32[8,256], index: 2, kind: input, shape index: {}]   ;;  %s230_s3 = inlined_call_operand.vmem [shape: f32[8,1], index: 3, kind: output, shape index: {0}]   ;;  %s231_s4 = inlined_call_operand.vmem [shape: f32[8,1], index: 4, kind: output, shape index: {1}]  }
   0x1   :  { %11 = vsyncpa [#allocation5], 0  ;;  %s157_s15 = smov [#allocation4]   ;;  %s158_s17 = smov [#allocation2]  }
   0x2   :  { %s28_s16 = sshll.u32 %s157_s15, 4  ;;  %s18_s18 = sshll.u32 %s158_s17, 4  ;;  %s29_s16 = int_to_ptr.vmem [resolvable:$true] %s28_s16  ;;  %s19_s18 = int_to_ptr.vmem [resolvable:$true] %s18_s18 }
   0x3   :  { %s87_s21 = scalar_lea.hbm %s228_s1, 256 }
   0x4   :  { %p88_p0 = scmp.ne.s32.totalorder %s228_s1, %s87_s21  ;;  %p91_p1 = scmp.lt.u32.totalorder %s87_s21, %s228_s1 }
   0x6   :  { %p93_p2 = pnand %p91_p1, %p88_p0 }
   0x8   :  { %96 = shalt.err (!%p93_p2)
}
   0x9   :  { %s97_s26 = scalar_lea.vmem %s29_s16, 256  ;;  %p102_p4 = scmp.lt.s32.totalorder %s29_s16, %s29_s16 }
   0xa   :  { %p98_p3 = scmp.ne.s32.totalorder %s29_s16, %s97_s26  ;;  %p103_p5 = scmp.lt.s32.totalorder %s97_s26, %s97_s26 }
   0xc   :  { %p104_p6 = por %p103_p5, %p102_p4 }
   0xe   :  { %p105_p7 = pnand %p104_p6, %p98_p3 }
  0x10   :  { %108 = shalt.err (!%p105_p7)
}
  0x11   :  { %31 = dma.hbm_to_vmem [thread:$0]  %s228_s1, 256, %s29_s16, [#allocation5]  }
  0x12   :  { %s109_s5 = scalar_lea.hbm %s227_s0, 256 }
  0x13   :  { %p110_p8 = scmp.ne.s32.totalorder %s227_s0, %s109_s5  ;;  %p113_p9 = scmp.lt.u32.totalorder %s109_s5, %s227_s0 }
  0x15   :  { %p115_p10 = pnand %p113_p9, %p110_p8 }
  0x17   :  { %118 = shalt.err (!%p115_p10)
}
  0x18   :  { %s119_s10 = scalar_lea.vmem %s19_s18, 256  ;;  %p124_p12 = scmp.lt.s32.totalorder %s19_s18, %s19_s18 }
  0x19   :  { %p120_p11 = scmp.ne.s32.totalorder %s19_s18, %s119_s10  ;;  %p125_p13 = scmp.lt.s32.totalorder %s119_s10, %s119_s10 }
  0x1b   :  { %p126_p0 = por %p125_p13, %p124_p12 }
  0x1d   :  { %p127_p1 = pnand %p126_p0, %p120_p11 }
  0x1f   :  { %130 = shalt.err (!%p127_p1)
}
  0x20   :  { %21 = dma.hbm_to_vmem [thread:$0]  %s227_s0, 256, %s19_s18, [#allocation3]  }
  0x21   :  { %s159_s12 = smov [#allocation6]   ;;  %s131_s16 = scalar_lea.hbm %s229_s2, 256 }
  0x22   :  { %s38_s13 = sshll.u32 %s159_s12, 4  ;;  %p132_p2 = scmp.ne.s32.totalorder %s229_s2, %s131_s16  ;;  %s39_s13 = int_to_ptr.vmem [resolvable:$true] %s38_s13 }
  0x23   :  { %p135_p3 = scmp.lt.u32.totalorder %s131_s16, %s229_s2 }
  0x25   :  { %p137_p4 = pnand %p135_p3, %p132_p2 }
  0x27   :  { %140 = shalt.err (!%p137_p4)
}
  0x28   :  { %s141_s22 = scalar_lea.vmem %s39_s13, 256  ;;  %p146_p6 = scmp.lt.s32.totalorder %s39_s13, %s39_s13 }
  0x29   :  { %p142_p5 = scmp.ne.s32.totalorder %s39_s13, %s141_s22  ;;  %p147_p7 = scmp.lt.s32.totalorder %s141_s22, %s141_s22 }
  0x2b   :  { %p148_p8 = por %p147_p7, %p146_p6 }
  0x2d   :  { %p149_p9 = pnand %p148_p8, %p142_p5 }
  0x2f   :  { %152 = shalt.err (!%p149_p9)
}
  0x30   :  { %41 = dma.hbm_to_vmem [thread:$0]  %s229_s2, 256, %s39_s13, [#allocation5]  }
  0x31   :  { %153 = dma.done.wait [#allocation3], 256  }
  0x32   :  { %154 = vsyncadd [#allocation3], 4294967040 }
  0x33   :  { %155 = dma.done.wait [#allocation5], 512  }
  0x34   :  { %156 = vsyncadd [#allocation5], 4294966784  ;;  %v51_v0 = vld [vmem:[#allocation6] sm:$0xff]  ;;  %v52_v1 = vld [vmem:[#allocation6 + $0x8] sm:$0xff]  ;;  %vm66_vm0 = vcmask 7168  }
  0x35   :  { %v53_v2 = vld [vmem:[#allocation2] sm:$0xff]  ;;  %v54_v3 = vld [vmem:[#allocation2 + $0x8] sm:$0xff]  ;;  %v57_v5 = vld [vmem:[#allocation4] sm:$0xff] }
  0x36   :  { %v55_v4 = vsub.f32 %v53_v2, %v51_v0  ;;  %v58_v6 = vld [vmem:[#allocation4 + $0x8] sm:$0xff]  ;;  %v56_v7 = vsub.f32 %v54_v3, %v52_v1  ;;  %v59_v8 = vsub.f32 %v57_v5, %v51_v0 }
  0x37   :  { %v60_v9 = vsub.f32 %v58_v6, %v52_v1 }
  0x38   :  { %v61_v10 = vmul.f32 %v55_v4, %v55_v4  ;;  %v62_v11 = vmul.f32 %v56_v7, %v56_v7  ;;  %v68_v12 = vmul.f32 %v59_v8, %v59_v8 }
  0x39   :  { %v69_v13 = vmul.f32 %v60_v9, %v60_v9 }
  0x3a   :  { %v63_v14 = vadd.f32 %v62_v11, %v61_v10 }
  0x3b   :  { %v70_v15 = vadd.f32 %v69_v13, %v68_v12 }
  0x3c   :  { %64 = vadd.xlane.f32.xlu0 %v63_v14 }
  0x40   :  { %71 = vadd.xlane.f32.xlu0 %v70_v15 }
  0xc9   :  { %v65_v16 = vpop.xlane.xlu0 %64 }
  0xca   :  { %67 = vst.msk [vmem:[%s230_s3] sm:$0xff] %vm66_vm0, %v65_v16 }
  0xcd   :  { %v72_v17 = vpop.xlane.xlu0 %71 }
  0xce   :  { %73 = vst.msk [vmem:[%s231_s4] sm:$0xff] %vm66_vm0, %v72_v17 }
  0xcf   :  { %82 = vsyncpa [#allocation3], 1 }
  0xd0   :  { %83 = vsyncpa [#allocation5], 1 }

</bundles_post_ra>
